<compile_context>
chip_gen: v6e
topology: v6e:2x2x1
jax: 0.10.0
libtpu: 0.0.40
codegen_flags: <defaults>
</compile_context>

<pallas_src>
from typing import NamedTuple

import jax
import jax.numpy as jnp
from jax.experimental import pallas as pl
from jax.experimental.pallas import tpu as pltpu

_LANE = 128
_BF16_SUBLANE = 16  # bf16 packs 16 rows per vreg


def _round_up(v, m):
    return (v + m - 1) // m * m


class PackedParams(NamedTuple):
    w1: jax.Array  # [n_pad,  n1_pad] bf16
    b1: jax.Array  # [1, n1_pad] f32
    w2: jax.Array  # [n1_pad, n2_pad] bf16
    b2: jax.Array  # [1, n2_pad] f32
    w3: jax.Array  # [n2_pad, n_pad]  bf16
    b3: jax.Array  # [1, n_pad] f32
    n: int
    n1: int
    n2: int


def _pad2(a, rows, cols, dtype):
    out = jnp.zeros((rows, cols), dtype)
    return out.at[: a.shape[0], : a.shape[1]].set(a.astype(dtype))


def pack_params(w1, b1, w2, b2, w3, b3):
    """Pad each weight/bias to its own lane-aligned shape, weights in bf16.

    Call ONCE when the parameters are created (hoisted out of the per-forward
    path).  Zero padding is exact: padded weight rows/cols and bias entries
    are 0, so padded activation *columns* stay 0 through every layer.
    """
    n, n1 = w1.shape
    n2 = w2.shape[1]
    n_pad = _round_up(n, _LANE)
    n1_pad = _round_up(n1, _LANE)
    n2_pad = _round_up(n2, _LANE)
    return PackedParams(
        w1=_pad2(w1, n_pad, n1_pad, jnp.bfloat16),
        b1=_pad2(b1, 1, n1_pad, jnp.float32),
        w2=_pad2(w2, n1_pad, n2_pad, jnp.bfloat16),
        b2=_pad2(b2, 1, n2_pad, jnp.float32),
        w3=_pad2(w3, n2_pad, n_pad, jnp.bfloat16),
        b3=_pad2(b3, 1, n_pad, jnp.float32),
        n=n, n1=n1, n2=n2,
    )


# ---------------------------------------------------------------------------
# Kernels
# ---------------------------------------------------------------------------
def _maxn_single_kernel(x_ref, w1_ref, b1_ref, w2_ref, b2_ref, w3_ref, b3_ref,
                        o_ref):
    # Single-shot: everything fits a single VMEM block.
    h = jnp.dot(x_ref[...], w1_ref[...], preferred_element_type=jnp.float32)
    h = jnp.maximum(h + b1_ref[...], 0.0)
    h = jnp.dot(h.astype(jnp.bfloat16), w2_ref[...],
                preferred_element_type=jnp.float32)
    h = jnp.maximum(h + b2_ref[...], 0.0)
    h = jnp.dot(h.astype(jnp.bfloat16), w3_ref[...],
                preferred_element_type=jnp.float32)
    o_ref[...] = jnp.maximum(h + b3_ref[...], 0.0)


def _maxn_tiled_kernel(x_ref, w1_ref, b1_ref, w2_ref, b2_ref, w3_ref, b3_ref,
                       o_ref, h1_ref, acc_ref):
    # Grid over n2 column-chunks of w2 / row-chunks of w3 (double-buffered by
    # BlockSpec).  h1 and the layer-3 accumulator stay resident in VMEM.
    @pl.when(pl.program_id(0) == 0)
    def _():
        h1 = jnp.dot(x_ref[...], w1_ref[...],
                     preferred_element_type=jnp.float32)
        h1_ref[...] = jnp.maximum(h1 + b1_ref[...], 0.0).astype(jnp.bfloat16)
        acc_ref[...] = jnp.zeros_like(acc_ref)

    h2 = jnp.dot(h1_ref[...], w2_ref[...], preferred_element_type=jnp.float32)
    h2 = jnp.maximum(h2 + b2_ref[...], 0.0)
    acc_ref[...] += jnp.dot(h2.astype(jnp.bfloat16), w3_ref[...],
                            preferred_element_type=jnp.float32)

    @pl.when(pl.program_id(0) == pl.num_programs(0) - 1)
    def _():
        o_ref[...] = jnp.maximum(acc_ref[...] + b3_ref[...], 0.0)


# ---------------------------------------------------------------------------
# Wrapper
# ---------------------------------------------------------------------------
def _vmem_cap_bytes():
    try:
        cap = int(pltpu.get_tpu_info().vmem_capacity_bytes)
    except Exception:
        cap = 64 * 1024 * 1024  # v7x worst case
    return cap * 7 // 8  # headroom for compiler-internal scratch


def maxn_forward(x, params: PackedParams, *, tn=128, force_tiled=False):
    """x: [B, n] f32.  params: pre-packed (pack_params).  Returns [B, n] f32."""
    B = x.shape[0]
    n = params.n
    n1_pad = params.w1.shape[1]
    n2_pad = params.w2.shape[1]
    n_pad = params.w3.shape[1]
    bp = _round_up(B, _BF16_SUBLANE)

    # Only x is padded per call (cast to bf16 first; weights are pre-packed).
    xp = jnp.zeros((bp, n_pad), jnp.bfloat16).at[:B, :n].set(
        x.astype(jnp.bfloat16))

    cap = _vmem_cap_bytes()
    bias_bytes = 4 * (n1_pad + n2_pad + n_pad)
    io_bytes = bp * n_pad * 2 + bp * n_pad * 4           # x bf16 + out f32
    single_bytes = io_bytes + bias_bytes + 2 * (
        n_pad * n1_pad + n1_pad * n2_pad + n2_pad * n_pad)
    single_limit = max(int(single_bytes * 1.5) + (2 << 20), 16 << 20)

    args = (xp, params.w1, params.b1, params.w2, params.b2, params.w3,
            params.b3)
    out_shape = jax.ShapeDtypeStruct((bp, n_pad), jnp.float32)

    if not force_tiled and single_limit <= cap:
        vmem = pl.BlockSpec(memory_space=pltpu.MemorySpace.VMEM)
        out = pl.pallas_call(
            _maxn_single_kernel,
            out_shape=out_shape,
            in_specs=[vmem] * 7,
            out_specs=vmem,
            compiler_params=pltpu.CompilerParams(
                vmem_limit_bytes=single_limit),
        )(*args)
    else:
        tn = min(tn, n2_pad)
        assert n2_pad % tn == 0
        num_chunks = n2_pad // tn
        tiled_bytes = (io_bytes + bias_bytes
                       + 2 * n_pad * n1_pad                   # resident w1
                       + 2 * 2 * (n1_pad * tn + tn * n_pad)   # 2x-buffered w2/w3
                       + 2 * 4 * tn                           # 2x-buffered b2
                       + 2 * bp * n1_pad                      # h1 scratch bf16
                       + 4 * bp * n_pad)                      # acc scratch f32
        tiled_limit = min(max(int(tiled_bytes * 1.5) + (2 << 20), 16 << 20),
                          cap)

        grid_spec = pltpu.PrefetchScalarGridSpec(
            num_scalar_prefetch=0,
            grid=(num_chunks,),
            in_specs=[
                pl.BlockSpec((bp, n_pad), lambda j: (0, 0)),      # x (resident)
                pl.BlockSpec((n_pad, n1_pad), lambda j: (0, 0)),  # w1 (resident)
                pl.BlockSpec((1, n1_pad), lambda j: (0, 0)),      # b1 (resident)
                pl.BlockSpec((n1_pad, tn), lambda j: (0, j)),     # w2 col chunk
                pl.BlockSpec((1, tn), lambda j: (0, j)),          # b2 chunk
                pl.BlockSpec((tn, n_pad), lambda j: (j, 0)),      # w3 row chunk
                pl.BlockSpec((1, n_pad), lambda j: (0, 0)),       # b3 (resident)
            ],
            out_specs=pl.BlockSpec((bp, n_pad), lambda j: (0, 0)),
            scratch_shapes=[
                pltpu.VMEM((bp, n1_pad), jnp.bfloat16),   # resident h1
                pltpu.VMEM((bp, n_pad), jnp.float32),     # layer-3 accumulator
            ],
        )
        out = pl.pallas_call(
            _maxn_tiled_kernel,
            out_shape=out_shape,
            grid_spec=grid_spec,
            compiler_params=pltpu.CompilerParams(
                dimension_semantics=("arbitrary",),
                vmem_limit_bytes=tiled_limit),
        )(*args)

    return out[:B, :n]


# ---------------------------------------------------------------------------
# Param init + references
# ---------------------------------------------------------------------------
def init_params(key, n):
    """Deterministic init mirroring the PyTorch module's __init__ shapes.

    xavier_normal for weights (std = sqrt(2 / (fan_in + fan_out))),
    uniform[0, 1) for biases.  Weights returned as [in, out].
    """
    n2 = n * (n - 1)
    n1 = 2 * n2
    ks = jax.random.split(key, 6)

    def xavier(k, fan_in, fan_out):
        std = (2.0 / (fan_in + fan_out)) ** 0.5
        return jax.random.normal(k, (fan_in, fan_out), dtype=jnp.float32) * std

    w1 = xavier(ks[0], n, n1)
    w2 = xavier(ks[1], n1, n2)
    w3 = xavier(ks[2], n2, n)
    b1 = jax.random.uniform(ks[3], (1, n1), dtype=jnp.float32)
    b2 = jax.random.uniform(ks[4], (1, n2), dtype=jnp.float32)
    b3 = jax.random.uniform(ks[5], (1, n), dtype=jnp.float32)
    return w1, b1, w2, b2, w3, b3


def _reference_packed(x, p: PackedParams):
    """Mirrors the kernel's bf16-operand / f32-accumulate arithmetic."""
    B, n = x.shape
    bp = _round_up(B, _BF16_SUBLANE)
    n_pad = p.w3.shape[1]
    xp = jnp.zeros((bp, n_pad), jnp.bfloat16).at[:B, :n].set(
        x.astype(jnp.bfloat16))
    h = jnp.maximum(
        jnp.dot(xp, p.w1, preferred_element_type=jnp.float32) + p.b1, 0.0)
    h = jnp.maximum(
        jnp.dot(h.astype(jnp.bfloat16), p.w2,
                preferred_element_type=jnp.float32) + p.b2, 0.0)
    h = jnp.maximum(
        jnp.dot(h.astype(jnp.bfloat16), p.w3,
                preferred_element_type=jnp.float32) + p.b3, 0.0)
    return h[:B, :n]


def _reference_f32(x, w1, b1, w2, b2, w3, b3):
    h = jnp.maximum(x @ w1 + b1, 0.0)
    h = jnp.maximum(h @ w2 + b2, 0.0)
    return jnp.maximum(h @ w3 + b3, 0.0)


# ---------------------------------------------------------------------------
if __name__ == "__main__":
    key = jax.random.PRNGKey(0)
    k_x, k_p, k_x2, k_p2 = jax.random.split(key, 4)

    # Case 1: small n -> single-block path (n=8: n1=112, n2=56).
    n, batch = 8, 2
    x = jax.random.uniform(k_x, (batch, n), dtype=jnp.float32)   # inputs in [0,1)
    raw = init_params(k_p, n)
    packed = pack_params(*raw)                                    # pack ONCE
    out = jax.block_until_ready(maxn_forward(x, packed))
    assert out.shape == (batch, n)
    ref_p = _reference_packed(x, packed)
    assert jnp.allclose(out, ref_p, atol=2e-3, rtol=2e-3)
    ref_f = _reference_f32(x, *raw)
    assert jnp.allclose(out, ref_f, atol=5e-2, rtol=5e-2)

    # Case 2: exercise the tiled w2/w3 streaming path (n=16: n1=480, n2=240,
    # n2_pad=256 -> 2 grid chunks of TN=128).
    n_t, batch_t = 16, 4
    x_t = jax.random.uniform(k_x2, (batch_t, n_t), dtype=jnp.float32)
    raw_t = init_params(k_p2, n_t)
    packed_t = pack_params(*raw_t)
    out_t = jax.block_until_ready(
        maxn_forward(x_t, packed_t, force_tiled=True))
    assert out_t.shape == (batch_t, n_t)
    ref_pt = _reference_packed(x_t, packed_t)
    assert jnp.allclose(out_t, ref_pt, atol=5e-3, rtol=5e-3)

    print("KERNEL_OK")
</pallas_src>

<mosaic_0001>
module attributes {stable_mosaic.version = 11 : i64} {
  func.func @_maxn_single_kernel(%arg0: memref<16x128xbf16, #tpu.memory_space<vmem>>, %arg1: memref<128x128xbf16, #tpu.memory_space<vmem>>, %arg2: memref<1x128xf32, #tpu.memory_space<vmem>>, %arg3: memref<128x128xbf16, #tpu.memory_space<vmem>>, %arg4: memref<1x128xf32, #tpu.memory_space<vmem>>, %arg5: memref<128x128xbf16, #tpu.memory_space<vmem>>, %arg6: memref<1x128xf32, #tpu.memory_space<vmem>>, %arg7: memref<16x128xf32, #tpu.memory_space<vmem>>) attributes {dimension_semantics = [], scalar_prefetch = 0 : i64, scratch_operands = 0 : i64, tpu.core_type = #tpu.core_type<tc>} {
    %c0 = arith.constant 0 : index
    %c0_0 = arith.constant 0 : index
    %0 = vector.load %arg0[%c0, %c0_0] : memref<16x128xbf16, #tpu.memory_space<vmem>>, vector<16x128xbf16>
    %c0_1 = arith.constant 0 : index
    %c0_2 = arith.constant 0 : index
    %1 = vector.load %arg1[%c0_1, %c0_2] : memref<128x128xbf16, #tpu.memory_space<vmem>>, vector<128x128xbf16>
    %cst = arith.constant dense<0.000000e+00> : vector<16x128xf32>
    %2 = tpu.matmul %0, %1, %cst {dimension_numbers = #tpu.dot_dimension_numbers<[1], [0], [0], [1], [0, 0, 1, 1], [], []>} : vector<16x128xbf16>, vector<128x128xbf16>, vector<16x128xf32> -> vector<16x128xf32>
    %c0_3 = arith.constant 0 : index
    %c0_4 = arith.constant 0 : index
    %3 = vector.load %arg2[%c0_3, %c0_4] : memref<1x128xf32, #tpu.memory_space<vmem>>, vector<1x128xf32>
    %4 = vector.broadcast %3 : vector<1x128xf32> to vector<16x128xf32>
    %5 = arith.addf %2, %4 : vector<16x128xf32>
    %cst_5 = arith.constant 0.000000e+00 : f32
    %6 = vector.broadcast %cst_5 : f32 to vector<16x128xf32>
    %7 = arith.maximumf %5, %6 : vector<16x128xf32>
    %8 = arith.truncf %7 : vector<16x128xf32> to vector<16x128xbf16>
    %c0_6 = arith.constant 0 : index
    %c0_7 = arith.constant 0 : index
    %9 = vector.load %arg3[%c0_6, %c0_7] : memref<128x128xbf16, #tpu.memory_space<vmem>>, vector<128x128xbf16>
    %cst_8 = arith.constant dense<0.000000e+00> : vector<16x128xf32>
    %10 = tpu.matmul %8, %9, %cst_8 {dimension_numbers = #tpu.dot_dimension_numbers<[1], [0], [0], [1], [0, 0, 1, 1], [], []>} : vector<16x128xbf16>, vector<128x128xbf16>, vector<16x128xf32> -> vector<16x128xf32>
    %c0_9 = arith.constant 0 : index
    %c0_10 = arith.constant 0 : index
    %11 = vector.load %arg4[%c0_9, %c0_10] : memref<1x128xf32, #tpu.memory_space<vmem>>, vector<1x128xf32>
    %12 = vector.broadcast %11 : vector<1x128xf32> to vector<16x128xf32>
    %13 = arith.addf %10, %12 : vector<16x128xf32>
    %cst_11 = arith.constant 0.000000e+00 : f32
    %14 = vector.broadcast %cst_11 : f32 to vector<16x128xf32>
    %15 = arith.maximumf %13, %14 : vector<16x128xf32>
    %16 = arith.truncf %15 : vector<16x128xf32> to vector<16x128xbf16>
    %c0_12 = arith.constant 0 : index
    %c0_13 = arith.constant 0 : index
    %17 = vector.load %arg5[%c0_12, %c0_13] : memref<128x128xbf16, #tpu.memory_space<vmem>>, vector<128x128xbf16>
    %cst_14 = arith.constant dense<0.000000e+00> : vector<16x128xf32>
    %18 = tpu.matmul %16, %17, %cst_14 {dimension_numbers = #tpu.dot_dimension_numbers<[1], [0], [0], [1], [0, 0, 1, 1], [], []>} : vector<16x128xbf16>, vector<128x128xbf16>, vector<16x128xf32> -> vector<16x128xf32>
    %c0_15 = arith.constant 0 : index
    %c0_16 = arith.constant 0 : index
    %19 = vector.load %arg6[%c0_15, %c0_16] : memref<1x128xf32, #tpu.memory_space<vmem>>, vector<1x128xf32>
    %20 = vector.broadcast %19 : vector<1x128xf32> to vector<16x128xf32>
    %21 = arith.addf %18, %20 : vector<16x128xf32>
    %cst_17 = arith.constant 0.000000e+00 : f32
    %22 = vector.broadcast %cst_17 : f32 to vector<16x128xf32>
    %23 = arith.maximumf %21, %22 : vector<16x128xf32>
    %c0_18 = arith.constant 0 : index
    %c0_19 = arith.constant 0 : index
    %24 = vector.load %arg7[%c0_18, %c0_19] : memref<16x128xf32, #tpu.memory_space<vmem>>, vector<16x128xf32>
    tpu.vector_store %arg7[%c0_18, %c0_19], %23 {strides = array<i32>} : memref<16x128xf32, #tpu.memory_space<vmem>>, vector<16x128xf32>,
    return
  }
}

</mosaic_0001>

<bundles_post_ra>
// kernel: tpu_custom_call.1
= control target key start
LH: loop header
LB: loop body
LE: loop exit
PB: predicated region body
PF: predicated region fallthrough
CT: control target
= control target key end

     0   :  { %12 = vsyncpa [#allocation3], 0  ;;  %s832_s0 = inlined_call_operand.hbm [shape: bf16[16,128], index: 0, kind: input, shape index: {}]   ;;  %s833_s1 = inlined_call_operand.hbm [shape: bf16[128,128], index: 1, kind: input, shape index: {}]   ;;  %s834_s2 = inlined_call_operand.vmem [shape: f32[1,128], index: 2, kind: input, shape index: {}]   ;;  %s835_s3 = inlined_call_operand.hbm [shape: bf16[128,128], index: 3, kind: input, shape index: {}]   ;;  %s836_s4 = inlined_call_operand.vmem [shape: f32[1,128], index: 4, kind: input, shape index: {}]   ;;  %s837_s5 = inlined_call_operand.hbm [shape: bf16[128,128], index: 5, kind: input, shape index: {}]   ;;  %s838_s6 = inlined_call_operand.vmem [shape: f32[1,128], index: 6, kind: input, shape index: {}]   ;;  %s839_s7 = inlined_call_operand.hbm [shape: f32[16,128], index: 7, kind: output, shape index: {}]  }
   0x1   :  { %13 = vsyncpa [#allocation6], 0 }
   0x2   :  { %14 = vsyncpa [#allocation9], 0 }
   0x3   :  { %15 = vsyncpa [#allocation4], 0  ;;  %s715_s24 = smov [#allocation5]   ;;  %s716_s26 = smov [#allocation2]  }
   0x4   :  { %s33_s25 = sshll.u32 %s715_s24, 4  ;;  %s21_s27 = sshll.u32 %s716_s26, 4  ;;  %s34_s25 = int_to_ptr.vmem [resolvable:$true] %s33_s25  ;;  %s22_s27 = int_to_ptr.vmem [resolvable:$true] %s21_s27 }
   0x5   :  { %s615_s28 = scalar_lea.vmem %s34_s25, 1024  ;;  %p620_p1 = scmp.lt.s32.totalorder %s34_s25, %s34_s25 }
   0x6   :  { %p616_p0 = scmp.ne.s32.totalorder %s34_s25, %s615_s28  ;;  %p621_p2 = scmp.lt.s32.totalorder %s615_s28, %s615_s28 }
   0x8   :  { %p622_p3 = por %p621_p2, %p620_p1 }
   0xa   :  { %p623_p4 = pnand %p622_p3, %p616_p0 }
   0xc   :  { %626 = shalt.err (!%p623_p4)
}
   0xd   :  { %s717_s29 = smov 64   ;;  %s718_s30 = smov 4  }
   0xe   :  { %39 = dma.hbm_to_vmem [thread:$0]  %s833_s1, 1024, %s34_s25, [#allocation6], %s717_s29, %s717_s29, %s718_s30  }
   0xf   :  { %s635_s10 = scalar_lea.vmem %s22_s27, 128  ;;  %p640_p6 = scmp.lt.s32.totalorder %s22_s27, %s22_s27 }
  0x10   :  { %p636_p5 = scmp.ne.s32.totalorder %s22_s27, %s635_s10  ;;  %p641_p7 = scmp.lt.s32.totalorder %s635_s10, %s635_s10 }
  0x12   :  { %p642_p8 = por %p641_p7, %p640_p6 }
  0x14   :  { %p643_p9 = pnand %p642_p8, %p636_p5 }
  0x16   :  { %646 = shalt.err (!%p643_p9)
}
  0x17   :  { %27 = dma.hbm_to_vmem [thread:$0]  %s832_s0, 128, %s22_s27, [#allocation3], %s717_s29, %s717_s29, %s718_s30  }
  0x18   :  { %s719_s13 = smov [#allocation7]   ;;  %s720_s15 = smov [#allocation8]  }
  0x19   :  { %s47_s14 = sshll.u32 %s719_s13, 4  ;;  %s61_s16 = sshll.u32 %s720_s15, 4  ;;  %s48_s14 = int_to_ptr.vmem [resolvable:$true] %s47_s14  ;;  %s62_s16 = int_to_ptr.vmem [resolvable:$true] %s61_s16 }
  0x1a   :  { %s655_s1 = scalar_lea.vmem %s48_s14, 1024  ;;  %p660_p11 = scmp.lt.s32.totalorder %s48_s14, %s48_s14 }
  0x1b   :  { %p656_p10 = scmp.ne.s32.totalorder %s48_s14, %s655_s1  ;;  %p661_p12 = scmp.lt.s32.totalorder %s655_s1, %s655_s1 }
  0x1d   :  { %p662_p13 = por %p661_p12, %p660_p11 }
  0x1f   :  { %p663_p0 = pnand %p662_p13, %p656_p10 }
  0x21   :  { %666 = shalt.err (!%p663_p0)
}
  0x22   :  { %53 = dma.hbm_to_vmem [thread:$0]  %s835_s3, 1024, %s48_s14, [#allocation6], %s717_s29, %s717_s29, %s718_s30  }
  0x23   :  { %s675_s0 = scalar_lea.vmem %s62_s16, 1024  ;;  %p680_p2 = scmp.lt.s32.totalorder %s62_s16, %s62_s16 }
  0x24   :  { %p676_p1 = scmp.ne.s32.totalorder %s62_s16, %s675_s0  ;;  %p681_p3 = scmp.lt.s32.totalorder %s675_s0, %s675_s0 }
  0x26   :  { %p682_p4 = por %p681_p3, %p680_p2 }
  0x28   :  { %p683_p5 = pnand %p682_p4, %p676_p1 }
  0x2a   :  { %686 = shalt.err (!%p683_p5)
}
  0x2b   :  { %67 = dma.hbm_to_vmem [thread:$0]  %s837_s5, 1024, %s62_s16, [#allocation9], %s717_s29, %s717_s29, %s718_s30  }
  0x2c   :  { %707 = dma.done.wait [#allocation3], 128  }
  0x2d   :  { %708 = vsyncadd [#allocation3], 4294967168 }
  0x2e   :  { %709 = dma.done.wait [#allocation6], 2048  }
  0x2f   :  { %710 = vsyncadd [#allocation6], 4294965248 }
  0x30   :  { %711 = dma.done.wait [#allocation9], 1024  }
  0x31   :  { %712 = vsyncadd [#allocation9], 4294966272  ;;  %v721_v0 = vmov 0.0   ;;  %vm722_vm0 = vmmov 0   ;;  %v582_v1 = vld [vmem:[#allocation5 + $0x38] sm:$0xff]   ;;  %v583_v2 = vld [vmem:[#allocation5 + $0x30] sm:$0xff]  }
  0x32   :  { %511 = vmatprep.subr.bf16.mxu0 %v721_v0  ;;  %527 = vmatprep.mubr.msk.bf16.mxu0 %vm722_vm0, %v721_v0  ;;  %v584_v3 = vld [vmem:[#allocation5 + $0x28] sm:$0xff]   ;;  %v591_v4 = vld [vmem:[#allocation7 + $0x38] sm:$0xff]   ;;  %v585_v5 = vld [vmem:[#allocation5 + $0x20] sm:$0xff]   ;;  %s723_s24 = smov [#allocation10]  }
  0x33   :  { %531 = vmatprep.subr.bf16.mxu1 %v721_v0  ;;  %547 = vmatprep.mubr.msk.bf16.mxu1 %vm722_vm0, %v721_v0  ;;  %v592_v6 = vld [vmem:[#allocation7 + $0x30] sm:$0xff]   ;;  %v586_v7 = vld [vmem:[#allocation5 + $0x18] sm:$0xff]   ;;  %v593_v8 = vld [vmem:[#allocation7 + $0x28] sm:$0xff]  }
  0x34   :  { %512 = vmatpush3.bf16.msra.mxu0 %v582_v1  ;;  %532 = vmatpush3.bf16.msra.mxu1 %v591_v4  ;;  %v587_v9 = vld [vmem:[#allocation5 + $0x10] sm:$0xff]   ;;  %v594_v10 = vld [vmem:[#allocation7 + $0x20] sm:$0xff]   ;;  %v588_v11 = vld [vmem:[#allocation5 + $0x8] sm:$0xff]  }
  0x35   :  { %513 = vmatprep.subr.bf16.mxu0 %v721_v0  ;;  %533 = vmatprep.subr.bf16.mxu1 %v721_v0  ;;  %v595_v12 = vld [vmem:[#allocation7 + $0x18] sm:$0xff]   ;;  %v589_v13 = vld [vmem:[#allocation5] sm:$0xff]   ;;  %v596_v15 = vld [vmem:[#allocation7 + $0x10] sm:$0xff]  }
  0x36   :  { %v590_v14 = vld [vmem:[#allocation2] sm:$0xff]   ;;  %v597_v16 = vld [vmem:[#allocation7 + $0x8] sm:$0xff]   ;;  %v598_v17 = vld [vmem:[#allocation7] sm:$0xff]  }
  0x37   :  { %v599_v18 = vld [vmem:[#allocation8 + $0x38] sm:$0xff]   ;;  %v600_v19 = vld [vmem:[#allocation8 + $0x30] sm:$0xff]   ;;  %v601_v20 = vld [vmem:[#allocation8 + $0x28] sm:$0xff]  }
  0x38   :  { %514 = vmatpush3.bf16.msra.mxu0 %v583_v2  ;;  %534 = vmatpush3.bf16.msra.mxu1 %v592_v6  ;;  %v602_v21 = vld [vmem:[#allocation8 + $0x20] sm:$0xff]   ;;  %v603_v22 = vld [vmem:[#allocation8 + $0x18] sm:$0xff]   ;;  %v604_v33 = vld [vmem:[#allocation8 + $0x10] sm:$0xff]  }
  0x39   :  { %515 = vmatprep.subr.bf16.mxu0 %v721_v0  ;;  %535 = vmatprep.subr.bf16.mxu1 %v721_v0  ;;  %v456_v23 = vld [vmem:[%s834_s2] ss:$0 sm:$0xff]  ;;  %v605_v34 = vld [vmem:[#allocation8 + $0x8] sm:$0xff]   ;;  %v606_v35 = vld [vmem:[#allocation8] sm:$0xff]  }
  0x3a   :  { %v466_v36 = vld [vmem:[%s836_s4] ss:$0 sm:$0xff]  ;;  %s442_s4 = sshll.u32 %s723_s24, 4  ;;  %s443_s4 = int_to_ptr.vmem [resolvable:$true] %s442_s4 }
  0x3b   :  { %v475_v46 = vld [vmem:[%s838_s6] ss:$0 sm:$0xff]  ;;  %s687_s25 = scalar_lea.vmem %s443_s4, 256  ;;  %p692_p7 = scmp.lt.s32.totalorder %s443_s4, %s443_s4 }
  0x3c   :  { %516 = vmatpush3.bf16.msra.mxu0 %v584_v3  ;;  %536 = vmatpush3.bf16.msra.mxu1 %v593_v8  ;;  %p688_p6 = scmp.ne.s32.totalorder %s443_s4, %s687_s25  ;;  %p693_p8 = scmp.lt.s32.totalorder %s687_s25, %s687_s25 }
  0x3d   :  { %517 = vmatprep.subr.bf16.mxu0 %v721_v0  ;;  %537 = vmatprep.subr.bf16.mxu1 %v721_v0 }
  0x3e   :  { %p694_p9 = por %p693_p8, %p692_p7 }
  0x40   :  { %518 = vmatpush3.bf16.msra.mxu0 %v585_v5  ;;  %538 = vmatpush3.bf16.msra.mxu1 %v594_v10  ;;  %p695_p10 = pnand %p694_p9, %p688_p6 }
  0x41   :  { %519 = vmatprep.subr.bf16.mxu0 %v721_v0  ;;  %539 = vmatprep.subr.bf16.mxu1 %v721_v0 }
  0x44   :  { %520 = vmatpush3.bf16.msra.mxu0 %v586_v7  ;;  %540 = vmatpush3.bf16.msra.mxu1 %v595_v12 }
  0x45   :  { %521 = vmatprep.subr.bf16.mxu0 %v721_v0  ;;  %541 = vmatprep.subr.bf16.mxu1 %v721_v0 }
  0x48   :  { %522 = vmatpush3.bf16.msra.mxu0 %v587_v9  ;;  %542 = vmatpush3.bf16.msra.mxu1 %v596_v15 }
  0x49   :  { %523 = vmatprep.subr.bf16.mxu0 %v721_v0  ;;  %543 = vmatprep.subr.bf16.mxu1 %v721_v0 }
  0x4c   :  { %524 = vmatpush3.bf16.msra.mxu0 %v588_v11  ;;  %544 = vmatpush3.bf16.msra.mxu1 %v597_v16 }
  0x4d   :  { %525 = vmatprep.subr.bf16.mxu0 %v721_v0  ;;  %545 = vmatprep.subr.bf16.mxu1 %v721_v0 }
  0x50   :  { %526 = vmatpush3.bf16.msra.mxu0 %v589_v13  ;;  %546 = vmatpush3.bf16.msra.mxu1 %v598_v17 }
  0x51   :  { %551 = vmatprep.subr.bf16.mxu0 %v721_v0 }
  0x53   :  { %528 = vmatmul.mubr.bf16.vlgmr.msra.gmra.mxu0 %v590_v14 }
  0x54   :  { %567 = vmatprep.mubr.msk.bf16.mxu0 %vm722_vm0, %v721_v0  ;;  %552 = vmatpush3.bf16.msra.mxu0 %v599_v18 }
  0x55   :  { %553 = vmatprep.subr.bf16.mxu0 %v721_v0 }
  0x58   :  { %554 = vmatpush3.bf16.msra.mxu0 %v600_v19 }
  0x59   :  { %555 = vmatprep.subr.bf16.mxu0 %v721_v0 }
  0x5c   :  { %556 = vmatpush3.bf16.msra.mxu0 %v601_v20 }
  0x5d   :  { %557 = vmatprep.subr.bf16.mxu0 %v721_v0 }
  0x60   :  { %558 = vmatpush3.bf16.msra.mxu0 %v602_v21 }
  0x61   :  { %559 = vmatprep.subr.bf16.mxu0 %v721_v0 }
  0x64   :  { %560 = vmatpush3.bf16.msra.mxu0 %v603_v22 }
  0x65   :  { %561 = vmatprep.subr.bf16.mxu0 %v721_v0 }
  0x68   :  { %562 = vmatpush3.bf16.msra.mxu0 %v604_v33 }
  0x69   :  { %563 = vmatprep.subr.bf16.mxu0 %v721_v0 }
  0x6c   :  { %564 = vmatpush3.bf16.msra.mxu0 %v605_v34 }
  0x6d   :  { %565 = vmatprep.subr.bf16.mxu0 %v721_v0 }
  0x70   :  { %566 = vmatpush3.bf16.msra.mxu0 %v606_v35 }
 0x113   :  { %v196_v24 = vpop.f32.mrf.mxu0 }
 0x114   :  { %v197_v26 = vadd.f32 %v456_v23, %v196_v24 }
 0x115   :  { %v529_v25 = vpop.f32.mrf.mxu0 }
 0x116   :  { %v203_v30 = vmax.f32 %v197_v26, 0.0 }
 0x117   :  { %v199_v27 = vpop.f32.mrf.mxu0 }
 0x118   :  { %v200_v28 = vadd.f32 %v456_v23, %v199_v27 }
 0x119   :  { %v530_v29 = vpop.f32.mrf.mxu0 }
 0x11a   :  { %v204_v31 = vmax.f32 %v200_v28, 0.0 }
 0x11c   :  { %v205_v32 = vpack.c.bf16 %v204_v31, %v203_v30 }
 0x11e   :  { %548 = vmatmul.mubr.bf16.vlgmr.msra.gmra.mxu1 %v205_v32 }
 0x1de   :  { %v311_v37 = vpop.f32.mrf.mxu1 }
 0x1df   :  { %v312_v39 = vadd.f32 %v466_v36, %v311_v37 }
 0x1e0   :  { %v549_v38 = vpop.f32.mrf.mxu1 }
 0x1e1   :  { %v318_v43 = vmax.f32 %v312_v39, 0.0 }
 0x1e2   :  { %v314_v40 = vpop.f32.mrf.mxu1 }
 0x1e3   :  { %v315_v41 = vadd.f32 %v466_v36, %v314_v40 }
 0x1e4   :  { %v550_v42 = vpop.f32.mrf.mxu1 }
 0x1e5   :  { %v319_v44 = vmax.f32 %v315_v41, 0.0 }
 0x1e7   :  { %v320_v45 = vpack.c.bf16 %v319_v44, %v318_v43 }
 0x1e9   :  { %568 = vmatmul.mubr.bf16.vlgmr.msra.gmra.mxu0 %v320_v45 }
 0x2a9   :  { %v426_v47 = vpop.f32.mrf.mxu0 }
 0x2aa   :  { %v427_v48 = vadd.f32 %v475_v46, %v426_v47 }
 0x2ab   :  { %v569_v49 = vpop.f32.mrf.mxu0 }
 0x2ac   :  { %v433_v50 = vmax.f32 %v427_v48, 0.0 }
 0x2ad   :  { %v429_v51 = vpop.f32.mrf.mxu0 }
 0x2ae   :  { %435 = vst [vmem:[#allocation10] sm:$0xff] %v433_v50  ;;  %v430_v52 = vadd.f32 %v475_v46, %v429_v51 }
 0x2af   :  { %v570_v53 = vpop.f32.mrf.mxu0 }
 0x2b0   :  { %v434_v54 = vmax.f32 %v430_v52, 0.0 }
 0x2b2   :  { %436 = vst [vmem:[#allocation10 + $0x8] sm:$0xff] %v434_v54 }
 0x2b3   :  { %698 = shalt.err (!%p695_p10)
}
 0x2b4   :  { %s724_s6 = smov 128   ;;  %s725_s26 = smov 8  }
 0x2b5   :  { %448 = dma.vmem_to_hbm [thread:$0]  %s443_s4, 256, %s839_s7, [#allocation4], %s724_s6, %s724_s6, %s725_s26  }
 0x2b6   :  { %713 = dma.done.wait [#allocation4], 256  }
 0x2b7   :  { %714 = vsyncadd [#allocation4], 4294967040 }
 0x2b8   :  { %452 = vsyncpa [#allocation3], 1 }
 0x2b9   :  { %453 = vsyncpa [#allocation6], 1 }
 0x2ba   :  { %454 = vsyncpa [#allocation9], 1 }
 0x2bb   :  { %455 = vsyncpa [#allocation4], 1 }

</bundles_post_ra>
